<compile_context>
chip_gen: v6e
topology: v6e:2x2x1
jax: 0.10.0
libtpu: 0.0.40
codegen_flags: <defaults>
</compile_context>

<pallas_src>
import functools
import math

import jax
import jax.numpy as jnp
import numpy as np
from jax.experimental import pallas as pl
from jax.experimental.pallas import tpu as pltpu

BN_EPS = 1e-5
LANE = 128
SUBLANE = 8


def _round_up(x, m):
    return (x + m - 1) // m * m


# ---------------------------------------------------------------------------
# Pass 1: tiled GEMM (conv as im2col) + per-tile channel sum / sum-of-squares.
#   grid = (num_m_tiles, num_k_tiles), K innermost ("arbitrary"), M "parallel".
#   y_ref is the f32 accumulator (same output block across the K axis).
# ---------------------------------------------------------------------------
def _gemm_stats_kernel(x_ref, w_ref, y_ref, stats_ref):
    # x_ref:     [TM, TK]         im2col patch tile (f32 or bf16)
    # w_ref:     [TK, Cpad]       reshaped conv weight tile (f32 or bf16)
    # y_ref:     [TM, Cpad] f32   raw conv output tile, accumulated over K
    # stats_ref: [8,  Cpad] f32   row 0 = per-channel sum, row 1 = sum of squares
    k = pl.program_id(1)

    @pl.when(k == 0)
    def _():
        y_ref[...] = jnp.zeros_like(y_ref)

    y_ref[...] += jnp.dot(x_ref[...], w_ref[...],
                          preferred_element_type=jnp.float32)

    @pl.when(k == pl.num_programs(1) - 1)
    def _():
        acc = y_ref[...]
        s = jnp.sum(acc, axis=0, keepdims=True)           # [1, Cpad]
        sq = jnp.sum(acc * acc, axis=0, keepdims=True)    # [1, Cpad]
        pad = jnp.zeros((SUBLANE - 2, acc.shape[1]), jnp.float32)
        stats_ref[...] = jnp.concatenate([s, sq, pad], axis=0)


# ---------------------------------------------------------------------------
# Pass 2: y * scale + shift, then ReLU.  scale/shift fold BN mean/var/gamma/beta.
# ---------------------------------------------------------------------------
def _bn_relu_kernel(y_ref, scale_ref, shift_ref, o_ref):
    y = y_ref[...] * scale_ref[...] + shift_ref[...]
    o_ref[...] = jnp.maximum(y, 0.0).astype(o_ref.dtype)


def _im2col_channels_last(x_cl, k, stride):
    """x_cl [N, D, H, W, C] -> patches [N*Do*Ho*Wo, k^3*C], columns ordered (kd, kh, kw, c).

    Channels-last slicing + a single concatenate along the last (lane) axis avoids
    the 6-D stack + transpose materialization of the previous version."""
    n, d, h, w, c = x_cl.shape
    do = (d - k) // stride + 1
    ho = (h - k) // stride + 1
    wo = (w - k) // stride + 1
    cols = []
    for kd in range(k):
        for kh in range(k):
            for kw in range(k):
                cols.append(
                    x_cl[:, kd:kd + stride * do:stride,
                            kh:kh + stride * ho:stride,
                            kw:kw + stride * wo:stride, :])
    p = jnp.concatenate(cols, axis=-1)               # [N, Do, Ho, Wo, k^3*C]
    return p.reshape(n * do * ho * wo, k * k * k * c), (n, do, ho, wo)


@functools.partial(jax.jit,
                   static_argnames=("kernel_size", "stride", "tile_m", "mxu_dtype"))
def conv3d_bn_relu(x, weight, gamma, beta, *, kernel_size=3, stride=1,
                   tile_m=512, mxu_dtype=jnp.float32):
    """Pallas forward of Conv3d(in, out, k, stride, bias=False) + BatchNorm3d(train) + ReLU.

    x:      [N, Cin, D, H, W]  float32 (NCDHW)
    weight: [Cout, Cin, k, k, k]
    gamma, beta: [Cout]
    returns [N, Cout, Do, Ho, Wo]
    """
    n, cin, d, h, w = x.shape
    cout = weight.shape[0]
    k = kernel_size
    tile_m = max(SUBLANE, _round_up(tile_m, SUBLANE))

    # One cheap transpose of the input to channels-last; all heavy data stays
    # channels-last / lane-dense from here on.
    x_cl = jnp.transpose(x, (0, 2, 3, 4, 1))
    patches, (_, do, ho, wo) = _im2col_channels_last(x_cl, k, stride)
    m, kdim = patches.shape

    # ---- TPU-friendly padding -------------------------------------------
    cout_pad = _round_up(cout, LANE)                 # lane-dense output
    k_pad = _round_up(kdim, LANE)                    # aligned MXU contraction dim
    m_pad = _round_up(m, tile_m)
    tile_k = math.gcd(k_pad, 512)                    # multiple of 128, divides k_pad

    patches = jnp.pad(patches, ((0, m_pad - m), (0, k_pad - kdim))).astype(mxu_dtype)
    w2d = jnp.transpose(weight, (2, 3, 4, 1, 0)).reshape(kdim, cout)   # (kd,kh,kw,cin) rows
    w2d = jnp.pad(w2d, ((0, k_pad - kdim), (0, cout_pad - cout))).astype(mxu_dtype)
    gamma_p = jnp.pad(gamma.astype(jnp.float32), (0, cout_pad - cout))
    beta_p = jnp.pad(beta.astype(jnp.float32), (0, cout_pad - cout))

    num_m = m_pad // tile_m
    num_k = k_pad // tile_k

    bytes_accessed = (patches.size * patches.dtype.itemsize
                      + w2d.size * w2d.dtype.itemsize
                      + m_pad * cout_pad * 4
                      + num_m * SUBLANE * cout_pad * 4)
    cost = pl.CostEstimate(flops=2 * m_pad * k_pad * cout_pad,
                           transcendentals=0,
                           bytes_accessed=bytes_accessed)

    # ---- Pass 1: conv GEMM + per-tile BN partial statistics --------------
    y_raw, stats = pl.pallas_call(
        _gemm_stats_kernel,
        out_shape=(
            jax.ShapeDtypeStruct((m_pad, cout_pad), jnp.float32),
            jax.ShapeDtypeStruct((num_m * SUBLANE, cout_pad), jnp.float32),
        ),
        grid=(num_m, num_k),
        in_specs=[
            pl.BlockSpec((tile_m, tile_k), lambda i, kk: (i, kk)),
            pl.BlockSpec((tile_k, cout_pad), lambda i, kk: (kk, 0)),
        ],
        out_specs=(
            pl.BlockSpec((tile_m, cout_pad), lambda i, kk: (i, 0)),
            pl.BlockSpec((SUBLANE, cout_pad), lambda i, kk: (i, 0)),
        ),
        compiler_params=pltpu.CompilerParams(
            dimension_semantics=("parallel", "arbitrary"),
            vmem_limit_bytes=32 * 1024 * 1024),
        cost_estimate=cost,
    )(patches, w2d)

    # ---- Tiny cross-tile combine of BN stats (f32, per channel) ----------
    # Padded M rows and padded Cout columns contribute exactly zero, and we
    # divide by the true M, so the statistics match un-tiled / un-padded BN.
    stats = stats.reshape(num_m, SUBLANE, cout_pad)
    ch_sum = jnp.sum(stats[:, 0, :], axis=0)
    ch_sqsum = jnp.sum(stats[:, 1, :], axis=0)
    mean = ch_sum / m
    var = jnp.maximum(ch_sqsum / m - mean * mean, 0.0)       # biased (training BN)
    inv = jax.lax.rsqrt(var + BN_EPS)
    scale = (gamma_p * inv).reshape(1, cout_pad)
    shift = (beta_p - mean * gamma_p * inv).reshape(1, cout_pad)

    # ---- Pass 2: normalize (one FMA / element) + ReLU ---------------------
    y2d = pl.pallas_call(
        _bn_relu_kernel,
        out_shape=jax.ShapeDtypeStruct((m_pad, cout_pad), jnp.float32),
        grid=(num_m,),
        in_specs=[
            pl.BlockSpec((tile_m, cout_pad), lambda i: (i, 0)),
            pl.BlockSpec((1, cout_pad), lambda i: (0, 0)),
            pl.BlockSpec((1, cout_pad), lambda i: (0, 0)),
        ],
        out_specs=pl.BlockSpec((tile_m, cout_pad), lambda i: (i, 0)),
        compiler_params=pltpu.CompilerParams(
            dimension_semantics=("parallel",),
            vmem_limit_bytes=32 * 1024 * 1024),
    )(y_raw, scale, shift)

    # Un-pad and return PyTorch NCDHW (module contract).
    y = y2d[:m, :cout].reshape(n, do, ho, wo, cout)
    return jnp.transpose(y, (0, 4, 1, 2, 3))


def _reference(x, weight, gamma, beta, stride):
    """Pure-JAX reference of the PyTorch forward (train-mode BN, no conv bias)."""
    y = jax.lax.conv_general_dilated(
        x, weight, window_strides=(stride,) * 3, padding="VALID",
        dimension_numbers=("NCDHW", "OIDHW", "NCDHW"))
    mean = y.mean(axis=(0, 2, 3, 4), keepdims=True)
    var = ((y - mean) ** 2).mean(axis=(0, 2, 3, 4), keepdims=True)
    y = (y - mean) * jax.lax.rsqrt(var + BN_EPS)
    y = y * gamma.reshape(1, -1, 1, 1, 1) + beta.reshape(1, -1, 1, 1, 1)
    return jnp.maximum(y, 0.0)


if __name__ == "__main__":
    # Module config: Conv3d(in_channels=4, out_channels=8, kernel_size=3, stride=1,
    #                       relu=True, bn=True)  -> conv has no bias.
    N, CIN, D, H, W = 2, 4, 8, 8, 8
    COUT, K, STRIDE = 8, 3, 1

    key = jax.random.PRNGKey(0)
    kx, kw, kg, kb = jax.random.split(key, 4)
    x = jax.random.normal(kx, (N, CIN, D, H, W), dtype=jnp.float32)
    weight = 0.1 * jax.random.normal(kw, (COUT, CIN, K, K, K), dtype=jnp.float32)
    gamma = 1.0 + 0.1 * jax.random.normal(kg, (COUT,), dtype=jnp.float32)
    beta = 0.05 * jax.random.normal(kb, (COUT,), dtype=jnp.float32)

    ref = jax.block_until_ready(_reference(x, weight, gamma, beta, STRIDE))

    # f32 MXU path (exact-ish), tile_m=128 so the toy shape exercises multiple
    # M tiles and the cross-tile BN-stat combine.
    out = conv3d_bn_relu(x, weight, gamma, beta,
                         kernel_size=K, stride=STRIDE, tile_m=128)
    out = jax.block_until_ready(out)
    assert out.shape == (N, COUT, D - K + 1, H - K + 1, W - K + 1), out.shape
    assert np.allclose(np.asarray(out), np.asarray(ref), atol=2e-4, rtol=2e-4)

    # bf16 MXU path (v6e/v7x throughput + half the patch DMA bytes); BN stays f32.
    out_bf16 = conv3d_bn_relu(x, weight, gamma, beta,
                              kernel_size=K, stride=STRIDE, tile_m=128,
                              mxu_dtype=jnp.bfloat16)
    out_bf16 = jax.block_until_ready(out_bf16)
    assert np.allclose(np.asarray(out_bf16), np.asarray(ref), atol=5e-2, rtol=5e-2)

    print("KERNEL_OK")
</pallas_src>

<mosaic_0001>
module attributes {stable_mosaic.version = 11 : i64} {
  func.func @_gemm_stats_kernel(%arg0: i32, %arg1: i32, %arg2: memref<128x128xf32, #tpu.memory_space<vmem>>, %arg3: memref<128x128xf32, #tpu.memory_space<vmem>>, %arg4: memref<128x128xf32, #tpu.memory_space<vmem>>, %arg5: memref<8x128xf32, #tpu.memory_space<vmem>>) attributes {dimension_semantics = [#tpu.dimension_semantics<parallel>, #tpu.dimension_semantics<arbitrary>], iteration_bounds = array<i64: 4, 1>, scalar_prefetch = 0 : i64, scratch_operands = 0 : i64, tpu.core_type = #tpu.core_type<tc>, window_params = [{transform_indices = @transform_0, window_bounds = array<i64: 128, 128>}, {transform_indices = @transform_1, window_bounds = array<i64: 128, 128>}, {transform_indices = @transform_2, window_bounds = array<i64: 128, 128>}, {transform_indices = @transform_3, window_bounds = array<i64: 8, 128>}]} {
    %c0_i32 = arith.constant 0 : i32
    %0 = arith.cmpi eq, %arg1, %c0_i32 : i32
    %1 = arith.extui %0 : i1 to i32
    %c0_i32_0 = arith.constant 0 : i32
    %2 = arith.cmpi ne, %1, %c0_i32_0 : i32
    scf.if %2 {
      %cst_10 = arith.constant 0.000000e+00 : f32
      %12 = vector.broadcast %cst_10 : f32 to vector<128x128xf32>
      %c0_11 = arith.constant 0 : index
      %c0_12 = arith.constant 0 : index
      %13 = vector.load %arg4[%c0_11, %c0_12] : memref<128x128xf32, #tpu.memory_space<vmem>>, vector<128x128xf32>
      tpu.vector_store %arg4[%c0_11, %c0_12], %12 {strides = array<i32>} : memref<128x128xf32, #tpu.memory_space<vmem>>, vector<128x128xf32>,
    } else {
    }
    %c0 = arith.constant 0 : index
    %c0_1 = arith.constant 0 : index
    %3 = vector.load %arg4[%c0, %c0_1] : memref<128x128xf32, #tpu.memory_space<vmem>>, vector<128x128xf32>
    %c0_2 = arith.constant 0 : index
    %c0_3 = arith.constant 0 : index
    %4 = vector.load %arg2[%c0_2, %c0_3] : memref<128x128xf32, #tpu.memory_space<vmem>>, vector<128x128xf32>
    %c0_4 = arith.constant 0 : index
    %c0_5 = arith.constant 0 : index
    %5 = vector.load %arg3[%c0_4, %c0_5] : memref<128x128xf32, #tpu.memory_space<vmem>>, vector<128x128xf32>
    %cst = arith.constant dense<0.000000e+00> : vector<128x128xf32>
    %6 = tpu.matmul %4, %5, %cst {dimension_numbers = #tpu.dot_dimension_numbers<[1], [0], [0], [1], [0, 0, 1, 1], [], []>} : vector<128x128xf32>, vector<128x128xf32>, vector<128x128xf32> -> vector<128x128xf32>
    %7 = arith.addf %3, %6 : vector<128x128xf32>
    %c0_6 = arith.constant 0 : index
    %c0_7 = arith.constant 0 : index
    %8 = vector.load %arg4[%c0_6, %c0_7] : memref<128x128xf32, #tpu.memory_space<vmem>>, vector<128x128xf32>
    tpu.vector_store %arg4[%c0_6, %c0_7], %7 {strides = array<i32>} : memref<128x128xf32, #tpu.memory_space<vmem>>, vector<128x128xf32>,
    %c0_i32_8 = arith.constant 0 : i32
    %9 = arith.cmpi eq, %arg1, %c0_i32_8 : i32
    %10 = arith.extui %9 : i1 to i32
    %c0_i32_9 = arith.constant 0 : i32
    %11 = arith.cmpi ne, %10, %c0_i32_9 : i32
    scf.if %11 {
      %c0_10 = arith.constant 0 : index
      %c0_11 = arith.constant 0 : index
      %12 = vector.load %arg4[%c0_10, %c0_11] : memref<128x128xf32, #tpu.memory_space<vmem>>, vector<128x128xf32>
      %cst_12 = arith.constant dense<0.000000e+00> : vector<128xf32>
      %13 = vector.multi_reduction <add>, %12, %cst_12 [0] : vector<128x128xf32> to vector<128xf32>
      %14 = vector.shape_cast %13 : vector<128xf32> to vector<1x128xf32>
      %15 = arith.mulf %12, %12 : vector<128x128xf32>
      %cst_13 = arith.constant dense<0.000000e+00> : vector<128xf32>
      %16 = vector.multi_reduction <add>, %15, %cst_13 [0] : vector<128x128xf32> to vector<128xf32>
      %17 = vector.shape_cast %16 : vector<128xf32> to vector<1x128xf32>
      %cst_14 = arith.constant 0.000000e+00 : f32
      %18 = vector.broadcast %cst_14 : f32 to vector<6x128xf32>
      %19 = tpu.concatenate %14, %17, %18 in 0 : vector<1x128xf32>, vector<1x128xf32>, vector<6x128xf32> -> vector<8x128xf32>
      %c0_15 = arith.constant 0 : index
      %c0_16 = arith.constant 0 : index
      %20 = vector.load %arg5[%c0_15, %c0_16] : memref<8x128xf32, #tpu.memory_space<vmem>>, vector<8x128xf32>
      tpu.vector_store %arg5[%c0_15, %c0_16], %19 {strides = array<i32>} : memref<8x128xf32, #tpu.memory_space<vmem>>, vector<8x128xf32>,
    } else {
    }
    return
  }
  func.func @transform_0(%arg0: i32, %arg1: i32) -> (i32, i32) {
    %c0_i32 = arith.constant 0 : i32
    return %arg0, %arg1 : i32, i32
  }
  func.func @transform_1(%arg0: i32, %arg1: i32) -> (i32, i32) {
    %c0_i32 = arith.constant 0 : i32
    %c0_i32_0 = arith.constant 0 : i32
    return %arg1, %c0_i32 : i32, i32
  }
  func.func @transform_2(%arg0: i32, %arg1: i32) -> (i32, i32) {
    %c0_i32 = arith.constant 0 : i32
    %c0_i32_0 = arith.constant 0 : i32
    return %arg0, %c0_i32 : i32, i32
  }
  func.func @transform_3(%arg0: i32, %arg1: i32) -> (i32, i32) {
    %c0_i32 = arith.constant 0 : i32
    %c0_i32_0 = arith.constant 0 : i32
    return %arg0, %c0_i32 : i32, i32
  }
}

module attributes {stable_mosaic.version = 11 : i64} {
  func.func @_bn_relu_kernel(%arg0: i32, %arg1: memref<128x128xf32, #tpu.memory_space<vmem>>, %arg2: memref<1x128xf32, #tpu.memory_space<vmem>>, %arg3: memref<1x128xf32, #tpu.memory_space<vmem>>, %arg4: memref<128x128xf32, #tpu.memory_space<vmem>>) attributes {dimension_semantics = [#tpu.dimension_semantics<parallel>], iteration_bounds = array<i64: 4>, scalar_prefetch = 0 : i64, scratch_operands = 0 : i64, tpu.core_type = #tpu.core_type<tc>, window_params = [{transform_indices = @transform_0, window_bounds = array<i64: 128, 128>}, {pipeline_mode = #tpu.pipeline_mode<synchronous>, transform_indices = @transform_1, window_bounds = array<i64: 1, 128>}, {pipeline_mode = #tpu.pipeline_mode<synchronous>, transform_indices = @transform_2, window_bounds = array<i64: 1, 128>}, {transform_indices = @transform_3, window_bounds = array<i64: 128, 128>}]} {
    %c0 = arith.constant 0 : index
    %c0_0 = arith.constant 0 : index
    %0 = vector.load %arg1[%c0, %c0_0] : memref<128x128xf32, #tpu.memory_space<vmem>>, vector<128x128xf32>
    %c0_1 = arith.constant 0 : index
    %c0_2 = arith.constant 0 : index
    %1 = vector.load %arg2[%c0_1, %c0_2] : memref<1x128xf32, #tpu.memory_space<vmem>>, vector<1x128xf32>
    %2 = vector.broadcast %1 : vector<1x128xf32> to vector<128x128xf32>
    %3 = arith.mulf %0, %2 : vector<128x128xf32>
    %c0_3 = arith.constant 0 : index
    %c0_4 = arith.constant 0 : index
    %4 = vector.load %arg3[%c0_3, %c0_4] : memref<1x128xf32, #tpu.memory_space<vmem>>, vector<1x128xf32>
    %5 = vector.broadcast %4 : vector<1x128xf32> to vector<128x128xf32>
    %6 = arith.addf %3, %5 : vector<128x128xf32>
    %cst = arith.constant 0.000000e+00 : f32
    %7 = vector.broadcast %cst : f32 to vector<128x128xf32>
    %8 = arith.maximumf %6, %7 : vector<128x128xf32>
    %c0_5 = arith.constant 0 : index
    %c0_6 = arith.constant 0 : index
    %9 = vector.load %arg4[%c0_5, %c0_6] : memref<128x128xf32, #tpu.memory_space<vmem>>, vector<128x128xf32>
    tpu.vector_store %arg4[%c0_5, %c0_6], %8 {strides = array<i32>} : memref<128x128xf32, #tpu.memory_space<vmem>>, vector<128x128xf32>,
    return
  }
  func.func @transform_0(%arg0: i32) -> (i32, i32) {
    %c0_i32 = arith.constant 0 : i32
    %c0_i32_0 = arith.constant 0 : i32
    return %arg0, %c0_i32 : i32, i32
  }
  func.func @transform_1(%arg0: i32) -> (i32, i32) {
    %c0_i32 = arith.constant 0 : i32
    %c0_i32_0 = arith.constant 0 : i32
    %c0_i32_1 = arith.constant 0 : i32
    return %c0_i32, %c0_i32_0 : i32, i32
  }
  func.func @transform_2(%arg0: i32) -> (i32, i32) {
    %c0_i32 = arith.constant 0 : i32
    %c0_i32_0 = arith.constant 0 : i32
    %c0_i32_1 = arith.constant 0 : i32
    return %c0_i32, %c0_i32_0 : i32, i32
  }
  func.func @transform_3(%arg0: i32) -> (i32, i32) {
    %c0_i32 = arith.constant 0 : i32
    %c0_i32_0 = arith.constant 0 : i32
    return %arg0, %c0_i32 : i32, i32
  }
}

</mosaic_0001>

<bundles_post_ra>
// kernel: conv3d_bn_relu.3
= control target key start
LH: loop header
LB: loop body
LE: loop exit
PB: predicated region body
PF: predicated region fallthrough
CT: control target
= control target key end

     0   :  { %s373_s12 = smov 0   ;;  %s468_s0 = inlined_call_operand.vmem [shape: f32[512,128], index: 0, kind: input, shape index: {}]   ;;  %s469_s1 = inlined_call_operand.vmem [shape: f32[1,128], index: 1, kind: input, shape index: {}]   ;;  %s470_s2 = inlined_call_operand.vmem [shape: f32[1,128], index: 2, kind: input, shape index: {}]   ;;  %s471_s3 = inlined_call_operand.vmem [shape: f32[512,128], index: 3, kind: output, shape index: {}]  }
   0x1 LB: > { %s324_s13 = sadd.s32 4294967295, %s351_s12   ;;  %p328_p0 = scmp.ge.s32.totalorder %s351_s12, 1  ;;  %s351_s12 = sphi %s373_s12, %s13_s12  }
   0x2   : > { %p138_p1 = scmp.lt.s32.totalorder %s351_s12, 5 }
   0x4   : > { %p139_p2 = pnand %p328_p0, %p138_p1 }
   0x5   : > { %s329_s14 = sshll.u32 (!%p139_p2), %s324_s13, 4 }
   0x6   : > { %142 = sbr.rel (%p139_p2) target bundleno = 32 (0x20), region = 32  ;;  %p163_p3 = scmp.lt.s32.totalorder (!%p139_p2), %s329_s14, 63 }
   0xb   : > { %s473_s14 = smov (!%p163_p3, %s329_s14), 63  ;;  %v384_v0 = vld [vmem:[%s469_s1] ss:$0 sm:$0xff] }
   0xc   : > { %s330_s15 = sshll.u32 %s473_s14, 3  ;;  %v394_v1 = vld [vmem:[%s470_s2] ss:$0 sm:$0xff] }
   0xd   : > { %s389_s20 = scalar_lea.vmem %s468_s0, %s330_s15  ;;  %s417_s25 = scalar_lea.vmem %s471_s3, %s330_s15 }
   0xe   : > { %v174_v2 = vld [vmem:[%s389_s20] sm:$0xff]  ;;  %v175_v3 = vld [vmem:[%s389_s20 + $0x8] sm:$0xff]  ;;  %v176_v4 = vld [vmem:[%s389_s20 + $0x10] sm:$0xff] }
   0xf   : > { %v197_v5 = vmul.f32 %v384_v0, %v174_v2  ;;  %v198_v6 = vmul.f32 %v384_v0, %v175_v3  ;;  %v199_v7 = vmul.f32 %v384_v0, %v176_v4  ;;  %v177_v8 = vld [vmem:[%s389_s20 + $0x18] sm:$0xff]  ;;  %v178_v9 = vld [vmem:[%s389_s20 + $0x20] sm:$0xff]  ;;  %v179_v10 = vld [vmem:[%s389_s20 + $0x28] sm:$0xff] }
  0x10   : > { %v200_v11 = vmul.f32 %v384_v0, %v177_v8  ;;  %v201_v12 = vmul.f32 %v384_v0, %v178_v9  ;;  %v202_v13 = vmul.f32 %v384_v0, %v179_v10  ;;  %v180_v14 = vld [vmem:[%s389_s20 + $0x30] sm:$0xff]  ;;  %v181_v15 = vld [vmem:[%s389_s20 + $0x38] sm:$0xff]  ;;  %v182_v24 = vld [vmem:[%s389_s20 + $0x40] sm:$0xff] }
  0x11   : > { %v220_v16 = vadd.f32 %v394_v1, %v197_v5  ;;  %v221_v17 = vadd.f32 %v394_v1, %v198_v6  ;;  %v222_v18 = vadd.f32 %v394_v1, %v199_v7  ;;  %v203_v19 = vmul.f32 %v384_v0, %v180_v14  ;;  %v183_v25 = vld [vmem:[%s389_s20 + $0x48] sm:$0xff]  ;;  %v184_v26 = vld [vmem:[%s389_s20 + $0x50] sm:$0xff]  ;;  %v185_v31 = vld [vmem:[%s389_s20 + $0x58] sm:$0xff] }
  0x12   : > { %v223_v20 = vadd.f32 %v394_v1, %v200_v11  ;;  %v224_v21 = vadd.f32 %v394_v1, %v201_v12  ;;  %v225_v22 = vadd.f32 %v394_v1, %v202_v13  ;;  %v204_v23 = vmul.f32 %v384_v0, %v181_v15  ;;  %v186_v32 = vld [vmem:[%s389_s20 + $0x60] sm:$0xff]  ;;  %v187_v33 = vld [vmem:[%s389_s20 + $0x68] sm:$0xff]  ;;  %v188_v38 = vld [vmem:[%s389_s20 + $0x70] sm:$0xff] }
  0x13   : > { %v236_v27 = vmax.f32 %v220_v16, 0.0  ;;  %v237_v28 = vmax.f32 %v221_v17, 0.0  ;;  %v238_v29 = vmax.f32 %v222_v18, 0.0  ;;  %v226_v30 = vadd.f32 %v394_v1, %v203_v19  ;;  %v189_v43 = vld [vmem:[%s389_s20 + $0x78] sm:$0xff] }
  0x14   : > { %v239_v34 = vmax.f32 %v223_v20, 0.0  ;;  %v240_v35 = vmax.f32 %v224_v21, 0.0  ;;  %v241_v36 = vmax.f32 %v225_v22, 0.0  ;;  %v227_v37 = vadd.f32 %v394_v1, %v204_v23 }
  0x15   : > { %252 = vst [vmem:[%s417_s25] sm:$0xff] %v236_v27  ;;  %253 = vst [vmem:[%s417_s25 + $0x8] sm:$0xff] %v237_v28  ;;  %v242_v39 = vmax.f32 %v226_v30, 0.0  ;;  %v205_v40 = vmul.f32 %v384_v0, %v182_v24  ;;  %v206_v41 = vmul.f32 %v384_v0, %v183_v25  ;;  %v207_v42 = vmul.f32 %v384_v0, %v184_v26 }
  0x16   : > { %254 = vst [vmem:[%s417_s25 + $0x10] sm:$0xff] %v238_v29  ;;  %255 = vst [vmem:[%s417_s25 + $0x18] sm:$0xff] %v239_v34  ;;  %v243_v44 = vmax.f32 %v227_v37, 0.0  ;;  %v208_v45 = vmul.f32 %v384_v0, %v185_v31  ;;  %v209_v46 = vmul.f32 %v384_v0, %v186_v32  ;;  %v210_v47 = vmul.f32 %v384_v0, %v187_v33 }
  0x17   : > { %256 = vst [vmem:[%s417_s25 + $0x20] sm:$0xff] %v240_v35  ;;  %257 = vst [vmem:[%s417_s25 + $0x28] sm:$0xff] %v241_v36  ;;  %v228_v48 = vadd.f32 %v394_v1, %v205_v40  ;;  %v229_v49 = vadd.f32 %v394_v1, %v206_v41  ;;  %v230_v50 = vadd.f32 %v394_v1, %v207_v42 }
  0x18   : > { %258 = vst [vmem:[%s417_s25 + $0x30] sm:$0xff] %v242_v39  ;;  %v211_v51 = vmul.f32 %v384_v0, %v188_v38  ;;  %259 = vst [vmem:[%s417_s25 + $0x38] sm:$0xff] %v243_v44  ;;  %v231_v52 = vadd.f32 %v394_v1, %v208_v45  ;;  %v232_v53 = vadd.f32 %v394_v1, %v209_v46 }
  0x19   : > { %v233_v54 = vadd.f32 %v394_v1, %v210_v47  ;;  %v212_v55 = vmul.f32 %v384_v0, %v189_v43  ;;  %v244_v56 = vmax.f32 %v228_v48, 0.0  ;;  %v245_v57 = vmax.f32 %v229_v49, 0.0 }
  0x1a   : > { %v246_v58 = vmax.f32 %v230_v50, 0.0  ;;  %v234_v59 = vadd.f32 %v394_v1, %v211_v51  ;;  %v247_v60 = vmax.f32 %v231_v52, 0.0  ;;  %v248_v61 = vmax.f32 %v232_v53, 0.0 }
  0x1b   : > { %v249_v62 = vmax.f32 %v233_v54, 0.0  ;;  %v235_v63 = vadd.f32 %v394_v1, %v212_v55  ;;  %260 = vst [vmem:[%s417_s25 + $0x40] sm:$0xff] %v244_v56  ;;  %261 = vst [vmem:[%s417_s25 + $0x48] sm:$0xff] %v245_v57 }
  0x1c   : > { %262 = vst [vmem:[%s417_s25 + $0x50] sm:$0xff] %v246_v58  ;;  %v250_v2 = vmax.f32 %v234_v59, 0.0  ;;  %263 = vst [vmem:[%s417_s25 + $0x58] sm:$0xff] %v247_v60 }
  0x1d   : > { %264 = vst [vmem:[%s417_s25 + $0x60] sm:$0xff] %v248_v61  ;;  %265 = vst [vmem:[%s417_s25 + $0x68] sm:$0xff] %v249_v62  ;;  %v251_v0 = vmax.f32 %v235_v63, 0.0 }
  0x1e   : > { %266 = vst [vmem:[%s417_s25 + $0x70] sm:$0xff] %v250_v2 }
  0x1f   : > { %267 = vst [vmem:[%s417_s25 + $0x78] sm:$0xff] %v251_v0 }
  0x20 PF: > { %s13_s12 = sadd.s32 1, %s351_s12  }
  0x21   : > { %p10_p4 = scmp.ge.s32.totalorder %s13_s12, 6  }
  0x23   :  { %12 = sbr.rel (!%p10_p4) target bundleno = 1 (0x1), region = 62 }

// kernel: conv3d_bn_relu.2
= control target key start
LH: loop header
LB: loop body
LE: loop exit
PB: predicated region body
PF: predicated region fallthrough
CT: control target
= control target key end

     0   :  { %s873_s12 = smov 0   ;;  %s875_s13 = smov 0   ;;  %s1005_s0 = inlined_call_operand.vmem [shape: f32[512,128], index: 0, kind: input, shape index: {}]   ;;  %s1006_s1 = inlined_call_operand.vmem [shape: f32[128,128], index: 1, kind: input, shape index: {}]   ;;  %s1007_s2 = inlined_call_operand.vmem [shape: f32[512,128], index: 2, kind: output, shape index: {0}]   ;;  %s1008_s3 = inlined_call_operand.vmem [shape: f32[32,128], index: 3, kind: output, shape index: {1}]  }
   0x1   :  { %s877_s14 = smov 0  }
   0x2 LB: > { %s26_s15 = sadd.s32 1, %s847_s13  ;;  %p676_p0 = scmp.ge.s32.totalorder %s851_s14, 1  ;;  %s851_s14 = sphi %s877_s14, %s14_s14   ;;  %s847_s13 = sphi %s875_s13, %s1010_s13   ;;  %s843_s12 = sphi %s873_s12, %s1009_s12  }
   0x3   : > { %p28_p1 = scmp.ge.s32.totalorder %s26_s15, 4  ;;  %p169_p2 = scmp.lt.s32.totalorder %s851_s14, 5 }
   0x5   : > { %s1012_s15 = smov (%p28_p1, %s26_s15), 0  ;;  %p170_p3 = pnand %p676_p0, %p169_p2 }
   0x6   : > { %s677_s20 = sshll.u32 (!%p170_p3), %s843_s12, 4  ;;  %p226_p5 = scmp.lt.s32.totalorder (!%p170_p3), %s843_s12, 3 }
   0x7   : > { %173 = sbr.rel (%p170_p3) target bundleno = 289 (0x121), region = 28  ;;  %p206_p4 = scmp.lt.s32.totalorder (!%p170_p3), %s677_s20, 63 }
   0xc   : > { %v297_v0 = vld [vmem:[%s1006_s1 + $0x78] sm:$0xff]  ;;  %v296_v1 = vld [vmem:[%s1006_s1 + $0x70] sm:$0xff]  ;;  %v295_v2 = vld [vmem:[%s1006_s1 + $0x68] sm:$0xff]  ;;  %s1014_s20 = smov (!%p206_p4, %s677_s20), 63  ;;  %s1016_s12 = smov (!%p226_p5, %s843_s12), 3  ;;  %vm552_vm0 = vcmask 1040384  }
   0xd   : > { %716 = vmatprep.subr.mxu0 %v297_v0  ;;  %772 = vmatprep.subr.mxu1 %v297_v0  ;;  %v294_v3 = vld [vmem:[%s1006_s1 + $0x60] sm:$0xff]  ;;  %v293_v4 = vld [vmem:[%s1006_s1 + $0x58] sm:$0xff]  ;;  %v292_v5 = vld [vmem:[%s1006_s1 + $0x50] sm:$0xff]  ;;  %s678_s4 = sshll.u32 %s1014_s20, 3  ;;  %s681_s20 = sshll.u32 %s1016_s12, 3  ;;  %vm554_vm1 = vcmask 1041408  }
   0xe   : > { %717 = vmatpush3.msra.mxu0 %v297_v0  ;;  %788 = vmatpush3.msra.mxu1 %v297_v0  ;;  %v291_v6 = vld [vmem:[%s1006_s1 + $0x48] sm:$0xff]  ;;  %v290_v7 = vld [vmem:[%s1006_s1 + $0x40] sm:$0xff]  ;;  %s926_s9 = scalar_lea.vmem %s1005_s0, %s678_s4  ;;  %v289_v8 = vld [vmem:[%s1006_s1 + $0x38] sm:$0xff]  ;;  %s973_s7 = scalar_lea.vmem %s1007_s2, %s678_s4 }
   0xf   : > { %718 = vmatprep.subr.mxu0 %v296_v1  ;;  %773 = vmatprep.subr.mxu1 %v296_v1  ;;  %v288_v9 = vld [vmem:[%s1006_s1 + $0x30] sm:$0xff]  ;;  %v266_v10 = vld [vmem:[%s926_s9] sm:$0xff]  ;;  %v287_v11 = vld [vmem:[%s1006_s1 + $0x28] sm:$0xff] }
  0x10   : > { %719 = vmatpush3.msra.mxu0 %v296_v1  ;;  %789 = vmatpush3.msra.mxu1 %v296_v1  ;;  %v286_v12 = vld [vmem:[%s1006_s1 + $0x20] sm:$0xff]  ;;  %v285_v13 = vld [vmem:[%s1006_s1 + $0x18] sm:$0xff]  ;;  %v284_v14 = vld [vmem:[%s1006_s1 + $0x10] sm:$0xff] }
  0x11   : > { %720 = vmatprep.subr.mxu0 %v295_v2  ;;  %774 = vmatprep.subr.mxu1 %v295_v2  ;;  %v283_v15 = vld [vmem:[%s1006_s1 + $0x8] sm:$0xff]  ;;  %v282_v16 = vld [vmem:[%s1006_s1] sm:$0xff]  ;;  %v268_v18 = vld [vmem:[%s926_s9 + $0x10] sm:$0xff] }
  0x12   : > { %721 = vmatpush3.msra.mxu0 %v295_v2  ;;  %790 = vmatpush3.msra.mxu1 %v295_v2  ;;  %v267_v17 = vld [vmem:[%s926_s9 + $0x8] sm:$0xff]  ;;  %v274_v19 = vld [vmem:[%s926_s9 + $0x40] sm:$0xff]  ;;  %v276_v21 = vld [vmem:[%s926_s9 + $0x50] sm:$0xff] }
  0x13   : > { %722 = vmatprep.subr.mxu0 %v294_v3  ;;  %775 = vmatprep.subr.mxu1 %v294_v3  ;;  %v275_v20 = vld [vmem:[%s926_s9 + $0x48] sm:$0xff]  ;;  %v269_v22 = vld [vmem:[%s926_s9 + $0x18] sm:$0xff]  ;;  %v270_v23 = vld [vmem:[%s926_s9 + $0x20] sm:$0xff] }
  0x14   : > { %723 = vmatpush3.msra.mxu0 %v294_v3  ;;  %791 = vmatpush3.msra.mxu1 %v294_v3  ;;  %v277_v24 = vld [vmem:[%s926_s9 + $0x58] sm:$0xff]  ;;  %v278_v25 = vld [vmem:[%s926_s9 + $0x60] sm:$0xff]  ;;  %v271_v26 = vld [vmem:[%s926_s9 + $0x28] sm:$0xff] }
  0x15   : > { %724 = vmatprep.subr.mxu0 %v293_v4  ;;  %776 = vmatprep.subr.mxu1 %v293_v4  ;;  %v272_v27 = vld [vmem:[%s926_s9 + $0x30] sm:$0xff]  ;;  %v279_v28 = vld [vmem:[%s926_s9 + $0x68] sm:$0xff]  ;;  %v273_v30 = vld [vmem:[%s926_s9 + $0x38] sm:$0xff] }
  0x16   : > { %725 = vmatpush3.msra.mxu0 %v293_v4  ;;  %792 = vmatpush3.msra.mxu1 %v293_v4  ;;  %v280_v29 = vld [vmem:[%s926_s9 + $0x70] sm:$0xff]  ;;  %v281_v31 = vld [vmem:[%s926_s9 + $0x78] sm:$0xff]  ;;  %s229_s9 = scalar_lea.vmem %s1008_s3, %s681_s20 }
  0x17   : > { %726 = vmatprep.subr.mxu0 %v292_v5  ;;  %777 = vmatprep.subr.mxu1 %v292_v5 }
  0x18   : > { %727 = vmatpush3.msra.mxu0 %v292_v5  ;;  %793 = vmatpush3.msra.mxu1 %v292_v5 }
  0x19   : > { %728 = vmatprep.subr.mxu0 %v291_v6  ;;  %778 = vmatprep.subr.mxu1 %v291_v6 }
  0x1a   : > { %729 = vmatpush3.msra.mxu0 %v291_v6  ;;  %794 = vmatpush3.msra.mxu1 %v291_v6 }
  0x1b   : > { %730 = vmatprep.subr.mxu0 %v290_v7  ;;  %779 = vmatprep.subr.mxu1 %v290_v7 }
  0x1c   : > { %731 = vmatpush3.msra.mxu0 %v290_v7  ;;  %795 = vmatpush3.msra.mxu1 %v290_v7 }
  0x1d   : > { %732 = vmatprep.subr.mxu0 %v289_v8  ;;  %780 = vmatprep.subr.mxu1 %v289_v8 }
  0x1e   : > { %733 = vmatpush3.msra.mxu0 %v289_v8  ;;  %796 = vmatpush3.msra.mxu1 %v289_v8 }
  0x1f   : > { %734 = vmatprep.subr.mxu0 %v288_v9  ;;  %748 = vmatprep.mubr.f32.mxu0 %v266_v10 }
  0x20   : > { %735 = vmatpush3.msra.mxu0 %v288_v9  ;;  %781 = vmatprep.subr.mxu1 %v288_v9 }
  0x21   : > { %736 = vmatprep.subr.mxu0 %v287_v11  ;;  %797 = vmatpush3.msra.mxu1 %v288_v9 }
  0x22   : > { %737 = vmatpush3.msra.mxu0 %v287_v11  ;;  %782 = vmatprep.subr.mxu1 %v287_v11 }
  0x23   : > { %738 = vmatprep.subr.mxu0 %v286_v12  ;;  %798 = vmatpush3.msra.mxu1 %v287_v11 }
  0x24   : > { %739 = vmatpush3.msra.mxu0 %v286_v12  ;;  %783 = vmatprep.subr.mxu1 %v286_v12 }
  0x25   : > { %740 = vmatprep.subr.mxu0 %v285_v13  ;;  %799 = vmatpush3.msra.mxu1 %v286_v12 }
  0x26   : > { %741 = vmatpush3.msra.mxu0 %v285_v13  ;;  %784 = vmatprep.subr.mxu1 %v285_v13 }
  0x27   : > { %742 = vmatprep.subr.mxu0 %v284_v14  ;;  %800 = vmatpush3.msra.mxu1 %v285_v13 }
  0x28   : > { %743 = vmatpush3.msra.mxu0 %v284_v14  ;;  %785 = vmatprep.subr.mxu1 %v284_v14 }
  0x29   : > { %744 = vmatprep.subr.mxu0 %v283_v15  ;;  %801 = vmatpush3.msra.mxu1 %v284_v14 }
  0x2a   : > { %745 = vmatpush3.msra.mxu0 %v283_v15  ;;  %786 = vmatprep.subr.mxu1 %v283_v15 }
  0x2b   : > { %746 = vmatprep.subr.mxu0 %v282_v16  ;;  %802 = vmatpush3.msra.mxu1 %v283_v15 }
  0x2c   : > { %747 = vmatpush3.msra.mxu0 %v282_v16  ;;  %787 = vmatprep.subr.mxu1 %v282_v16 }
  0x2d   : > { %749 = vmatmul.mubr.f32.vlgmr.msra.gmra.mxu0 %v267_v17  ;;  %803 = vmatpush3.msra.mxu1 %v282_v16 }
  0x2e   : > { %751 = vmatprep.mubr.f32.mxu0 %v268_v18  ;;  %760 = vmatprep.mubr.f32.mxu1 %v274_v19 }
  0x2f   : > { %761 = vmatmul.mubr.f32.vlgmr.msra.gmra.mxu1 %v275_v20 }
  0x30   : > { %763 = vmatprep.mubr.f32.mxu1 %v276_v21 }
  0x31   : > { %752 = vmatmul.mubr.f32.gmra.mxu0 %v269_v22 }
  0x32   : > { %754 = vmatprep.mubr.f32.mxu0 %v270_v23 }
  0x33   : > { %764 = vmatmul.mubr.f32.gmra.mxu1 %v277_v24 }
  0x34   : > { %766 = vmatprep.mubr.f32.mxu1 %v278_v25 }
  0x35   : > { %755 = vmatmul.mubr.f32.gmra.mxu0 %v271_v26 }
  0x36   : > { %757 = vmatprep.mubr.f32.mxu0 %v272_v27 }
  0x37   : > { %767 = vmatmul.mubr.f32.gmra.mxu1 %v279_v28 }
  0x38   : > { %769 = vmatprep.mubr.f32.mxu1 %v280_v29 }
  0x39   : > { %758 = vmatmul.mubr.f32.gmra.mxu0 %v273_v30 }
  0x3b   : > { %770 = vmatmul.mubr.f32.gmra.mxu1 %v281_v31 }
  0xed   : > { %v750_v32 = vpop.f32.mrf.mxu0 }
  0xee   : > { %460 = vst [vmem:[%s973_s7 + $0x8] sm:$0xff] %v750_v32  ;;  %v516_v40 = vmul.f32 %v750_v32, %v750_v32 }
  0xef   : > { %v364_v33 = vpop.f32.mrf.mxu0  ;;  %v762_v34 = vpop.f32.mrf.mxu1 }
  0xf0   : > { %459 = vst [vmem:[%s973_s7] sm:$0xff] %v364_v33  ;;  %v515_v37 = vmul.f32 %v364_v33, %v364_v33  ;;  %468 = vst [vmem:[%s973_s7 + $0x48] sm:$0xff] %v762_v34  ;;  %v494_v41 = vadd.f32 %v750_v32, %v364_v33  ;;  %v524_v8 = vmul.f32 %v762_v34, %v762_v34 }
  0xf1   : > { %v753_v35 = vpop.f32.mrf.mxu0  ;;  %v404_v36 = vpop.f32.mrf.mxu1 }
  0xf2   : > { %462 = vst [vmem:[%s973_s7 + $0x18] sm:$0xff] %v753_v35  ;;  %467 = vst [vmem:[%s973_s7 + $0x40] sm:$0xff] %v404_v36  ;;  %v531_v44 = vadd.f32 %v516_v40, %v515_v37  ;;  %v518_v49 = vmul.f32 %v753_v35, %v753_v35  ;;  %v523_v6 = vmul.f32 %v404_v36, %v404_v36 }
  0xf3   : > { %v374_v38 = vpop.f32.mrf.mxu0  ;;  %v765_v39 = vpop.f32.mrf.mxu1 }
  0xf4   : > { %461 = vst [vmem:[%s973_s7 + $0x10] sm:$0xff] %v374_v38  ;;  %v495_v45 = vadd.f32 %v494_v41, %v374_v38  ;;  %v517_v46 = vmul.f32 %v374_v38, %v374_v38  ;;  %470 = vst [vmem:[%s973_s7 + $0x58] sm:$0xff] %v765_v39  ;;  %v526_v14 = vmul.f32 %v765_v39, %v765_v39 }
  0xf5   : > { %v756_v42 = vpop.f32.mrf.mxu0  ;;  %v414_v43 = vpop.f32.mrf.mxu1 }
  0xf6   : > { %v532_v50 = vadd.f32 %v531_v44, %v517_v46  ;;  %464 = vst [vmem:[%s973_s7 + $0x28] sm:$0xff] %v756_v42  ;;  %v496_v51 = vadd.f32 %v753_v35, %v495_v45  ;;  %469 = vst [vmem:[%s973_s7 + $0x50] sm:$0xff] %v414_v43  ;;  %v520_v59 = vmul.f32 %v756_v42, %v756_v42 }
  0xf7   : > { %v384_v47 = vpop.f32.mrf.mxu0  ;;  %v768_v48 = vpop.f32.mrf.mxu1  ;;  %v525_v12 = vmul.f32 %v414_v43, %v414_v43 }
  0xf8   : > { %463 = vst [vmem:[%s973_s7 + $0x20] sm:$0xff] %v384_v47  ;;  %v497_v54 = vadd.f32 %v496_v51, %v384_v47  ;;  %v519_v55 = vmul.f32 %v384_v47, %v384_v47  ;;  %v533_v56 = vadd.f32 %v532_v50, %v518_v49  ;;  %472 = vst [vmem:[%s973_s7 + $0x68] sm:$0xff] %v768_v48 }
  0xf9   : > { %v759_v52 = vpop.f32.mrf.mxu0  ;;  %v424_v53 = vpop.f32.mrf.mxu1  ;;  %v528_v20 = vmul.f32 %v768_v48, %v768_v48 }
  0xfa   : > { %v534_v60 = vadd.f32 %v533_v56, %v519_v55  ;;  %466 = vst [vmem:[%s973_s7 + $0x38] sm:$0xff] %v759_v52  ;;  %v498_v61 = vadd.f32 %v756_v42, %v497_v54  ;;  %471 = vst [vmem:[%s973_s7 + $0x60] sm:$0xff] %v424_v53  ;;  %v522_v2 = vmul.f32 %v759_v52, %v759_v52 }
  0xfb   : > { %v394_v57 = vpop.f32.mrf.mxu0  ;;  %v771_v58 = vpop.f32.mrf.mxu1  ;;  %v527_v18 = vmul.f32 %v424_v53, %v424_v53 }
  0xfc   : > { %465 = vst [vmem:[%s973_s7 + $0x30] sm:$0xff] %v394_v57  ;;  %v499_v63 = vadd.f32 %v498_v61, %v394_v57  ;;  %v521_v0 = vmul.f32 %v394_v57, %v394_v57  ;;  %v535_v1 = vadd.f32 %v534_v60, %v520_v59  ;;  %474 = vst [vmem:[%s973_s7 + $0x78] sm:$0xff] %v771_v58 }
  0xfd   : > { %v434_v62 = vpop.f32.mrf.mxu1  ;;  %v530_v26 = vmul.f32 %v771_v58, %v771_v58 }
  0xfe   : > { %v536_v3 = vadd.f32 %v535_v1, %v521_v0  ;;  %v500_v4 = vadd.f32 %v759_v52, %v499_v63  ;;  %473 = vst [vmem:[%s973_s7 + $0x70] sm:$0xff] %v434_v62  ;;  %v529_v24 = vmul.f32 %v434_v62, %v434_v62 }
 0x100   : > { %v501_v5 = vadd.f32 %v500_v4, %v404_v36  ;;  %v537_v7 = vadd.f32 %v536_v3, %v522_v2 }
 0x102   : > { %v538_v9 = vadd.f32 %v537_v7, %v523_v6  ;;  %v502_v10 = vadd.f32 %v762_v34, %v501_v5 }
 0x104   : > { %v503_v11 = vadd.f32 %v502_v10, %v414_v43  ;;  %v539_v13 = vadd.f32 %v538_v9, %v524_v8 }
 0x106   : > { %v540_v15 = vadd.f32 %v539_v13, %v525_v12  ;;  %v504_v16 = vadd.f32 %v765_v39, %v503_v11 }
 0x108   : > { %v505_v17 = vadd.f32 %v504_v16, %v424_v53  ;;  %v541_v19 = vadd.f32 %v540_v15, %v526_v14 }
 0x10a   : > { %v542_v21 = vadd.f32 %v541_v19, %v527_v18  ;;  %v506_v22 = vadd.f32 %v768_v48, %v505_v17 }
 0x10c   : > { %v507_v23 = vadd.f32 %v506_v22, %v434_v62  ;;  %v543_v25 = vadd.f32 %v542_v21, %v528_v20 }
 0x10e   : > { %v508_v27 = vadd.f32 %v771_v58, %v507_v23  ;;  %v544_v28 = vadd.f32 %v543_v25, %v529_v24 }
 0x110   : > { %v509_v29 = vrot.slane %v508_v27, 4  ;;  %v545_v30 = vadd.f32 %v544_v28, %v530_v26 }
 0x112   : > { %v510_v31 = vadd.f32 %v509_v29, %v508_v27  ;;  %v546_v32 = vrot.slane %v545_v30, 4 }
 0x114   : > { %v511_v33 = vrot.slane %v510_v31, 2  ;;  %v547_v34 = vadd.f32 %v546_v32, %v545_v30 }
 0x116   : > { %v512_v35 = vadd.f32 %v511_v33, %v510_v31  ;;  %v548_v36 = vrot.slane %v547_v34, 2 }
 0x118   : > { %v513_v37 = vrot.slane %v512_v35, 1  ;;  %v549_v38 = vadd.f32 %v548_v36, %v547_v34 }
 0x11a   : > { %v550_v39 = vrot.slane %v549_v38, 1  ;;  %v514_v40 = vadd.f32 %v513_v37, %v512_v35 }
 0x11c   : > { %v551_v41 = vadd.f32 %v550_v39, %v549_v38 }
 0x11e   : > { %v553_v42 = vsel %vm552_vm0, %v514_v40, %v551_v41 }
 0x11f   : > { %v555_v43 = vsel %vm554_vm1, %v553_v42, 0.0 }
 0x120   : > { %556 = vst [vmem:[%s229_s9] sm:$0xff] %v555_v43 }
 0x121 PF: > { %s14_s14 = sadd.s32 1, %s851_s14   ;;  %s1009_s12 = smov %s847_s13 }
 0x122   : > { %p11_p6 = scmp.ge.s32.totalorder %s14_s14, 6   ;;  %s1010_s13 = smov %s1012_s15 }
 0x124   :  { %13 = sbr.rel (!%p11_p6) target bundleno = 2 (0x2), region = 81 }

</bundles_post_ra>
